<compile_context>
chip_gen: v5e
topology: v5e:2x2
jax: 0.10.0
libtpu: 0.0.40
codegen_flags: <defaults>
</compile_context>

<pallas_src>
import functools
import math

import jax
import jax.numpy as jnp
from jax.experimental import pallas as pl
from jax.experimental.pallas import tpu as pltpu


_VMEM_LIMIT_BYTES = 32 * 1024 * 1024    # safe scoped-VMEM cap on v5e (16 MiB default),
                                        # v6e (128 MiB phys) and v7x (64 MiB phys).
_INPUT_VMEM_BUDGET = 8 * 1024 * 1024    # target bytes for 2 inputs x 2 pipeline buffers


def _round_up(n, m):
    return ((n + m - 1) // m) * m


# ---------------------------------------------------------------------------
# Kernels
# ---------------------------------------------------------------------------
def _cosine_sublane_kernel(x0_ref, x1_ref, o_ref, *, eps):
    """Reduction dim on sublanes: x*_ref (1, D, TILE_S), o_ref (1, 1, TILE_S)."""
    a = x0_ref[...].astype(jnp.float32)
    b = x1_ref[...].astype(jnp.float32)
    dot = jnp.sum(a * b, axis=1, keepdims=True)       # (1, 1, TILE_S)
    w0 = jnp.sum(a * a, axis=1, keepdims=True)
    w1 = jnp.sum(b * b, axis=1, keepdims=True)
    # ATen: cos = dot / sqrt(clamp(|a|^2 * |b|^2, eps^2)); rsqrt runs on the EUP slot.
    inv = jax.lax.rsqrt(jnp.maximum(w0 * w1, eps * eps))
    o_ref[...] = (dot * inv).astype(o_ref.dtype)


def _cosine_lane_kernel(x0_ref, x1_ref, o_ref, *, eps):
    """Reduction dim on lanes: x*_ref (TILE_M, D), o_ref (TILE_M, 1)."""
    a = x0_ref[...].astype(jnp.float32)
    b = x1_ref[...].astype(jnp.float32)
    dot = jnp.sum(a * b, axis=-1, keepdims=True)
    w0 = jnp.sum(a * a, axis=-1, keepdims=True)
    w1 = jnp.sum(b * b, axis=-1, keepdims=True)
    inv = jax.lax.rsqrt(jnp.maximum(w0 * w1, eps * eps))
    o_ref[...] = (dot * inv).astype(o_ref.dtype)


# ---------------------------------------------------------------------------
# Tile sizing from a VMEM budget (2 inputs x 2 pipeline buffers live at once)
# ---------------------------------------------------------------------------
def _pick_tile_lanes(d, m_post, itemsize):
    d_pad = _round_up(max(d, 1), 8)                 # reduction dim lives on sublanes
    per_lane_bytes = 4 * d_pad * itemsize           # 2 inputs x 2 buffers
    tile = (_INPUT_VMEM_BUDGET // per_lane_bytes) // 128 * 128
    tile = max(128, min(tile, 4096))
    if m_post <= tile:
        return m_post                               # full extent (allowed even if %128 != 0)
    return tile


def _pick_tile_rows(d, m, itemsize):
    d_pad = _round_up(max(d, 1), 128)               # reduction dim lives on lanes
    per_row_bytes = 4 * d_pad * itemsize
    tile = (_INPUT_VMEM_BUDGET // per_row_bytes) // 8 * 8
    tile = max(8, min(tile, 1024))
    if m <= tile:
        return m
    return tile


# ---------------------------------------------------------------------------
# Wrapper
# ---------------------------------------------------------------------------
def cosine_pair_forward(x0, x1, *, dim=1, eps=1e-8):
    """Cosine similarity between x0 and x1 along `dim` (PyTorch F.cosine_similarity)."""
    assert x0.shape == x1.shape, "x0/x1 must have identical shapes"
    ndim = x0.ndim
    dim = dim % ndim
    shape = x0.shape
    d = shape[dim]
    out_shape = shape[:dim] + shape[dim + 1:]
    m_pre = math.prod(shape[:dim])
    m_post = math.prod(shape[dim + 1:])
    itemsize = jnp.dtype(x0.dtype).itemsize
    eps = float(eps)

    if m_post > 1:
        # Reduction dim is NOT last (e.g. NCHW, dim=1): free reshape, reduce over
        # sublanes, positions after `dim` sit on lanes -> lane-dense output blocks.
        x0_3d = x0.reshape(m_pre, d, m_post)
        x1_3d = x1.reshape(m_pre, d, m_post)
        tile_s = _pick_tile_lanes(d, m_post, itemsize)
        grid = (m_pre, pl.cdiv(m_post, tile_s))
        out = pl.pallas_call(
            functools.partial(_cosine_sublane_kernel, eps=eps),
            out_shape=jax.ShapeDtypeStruct((m_pre, 1, m_post), x0.dtype),
            grid=grid,
            in_specs=[
                pl.BlockSpec((1, d, tile_s), lambda i, j: (i, 0, j)),
                pl.BlockSpec((1, d, tile_s), lambda i, j: (i, 0, j)),
            ],
            out_specs=pl.BlockSpec((1, 1, tile_s), lambda i, j: (i, 0, j)),
            compiler_params=pltpu.CompilerParams(
                # Grid points are independent row/column tiles (no cross-step carry).
                dimension_semantics=("parallel", "parallel"),
                vmem_limit_bytes=_VMEM_LIMIT_BYTES,
            ),
        )(x0_3d, x1_3d)
        return out.reshape(out_shape)

    # Reduction dim is the last axis (e.g. (B, H) embeddings with dim=1): rows on
    # sublanes, reduction over lanes.  Output is (M, 1); output bytes are negligible
    # relative to the (M, D) inputs in this regime.
    x0_2d = x0.reshape(-1, d)
    x1_2d = x1.reshape(-1, d)
    m = x0_2d.shape[0]
    tile_m = _pick_tile_rows(d, m, itemsize)
    grid = (pl.cdiv(m, tile_m),)
    out = pl.pallas_call(
        functools.partial(_cosine_lane_kernel, eps=eps),
        out_shape=jax.ShapeDtypeStruct((m, 1), x0.dtype),
        grid=grid,
        in_specs=[
            pl.BlockSpec((tile_m, d), lambda i: (i, 0)),
            pl.BlockSpec((tile_m, d), lambda i: (i, 0)),
        ],
        out_specs=pl.BlockSpec((tile_m, 1), lambda i: (i, 0)),
        compiler_params=pltpu.CompilerParams(
            dimension_semantics=("parallel",),
            vmem_limit_bytes=_VMEM_LIMIT_BYTES,
        ),
    )(x0_2d, x1_2d)
    return out[:, 0].reshape(out_shape)


def cosine_pair_reference(x0, x1, *, dim=1, eps=1e-8):
    """Pure-JAX reference mirroring modern ATen cosine_similarity semantics."""
    x0 = x0.astype(jnp.float32)
    x1 = x1.astype(jnp.float32)
    dot = jnp.sum(x0 * x1, axis=dim)
    w0 = jnp.sum(x0 * x0, axis=dim)
    w1 = jnp.sum(x1 * x1, axis=dim)
    return dot / jnp.sqrt(jnp.maximum(w0 * w1, eps * eps))


if __name__ == "__main__":
    key = jax.random.PRNGKey(0)
    k0, k1, k2, k3 = jax.random.split(key, 4)

    # Case 1: 4-D feature maps, cosine similarity along the channel dim (dim=1, NCHW).
    x0 = jax.random.normal(k0, (2, 4, 16, 16), jnp.float32)
    x1 = jax.random.normal(k1, (2, 4, 16, 16), jnp.float32)
    out = cosine_pair_forward(x0, x1, dim=1)
    out = jax.block_until_ready(out)
    ref = cosine_pair_reference(x0, x1, dim=1)
    assert out.shape == (2, 16, 16)
    assert jnp.allclose(out, ref, atol=1e-5, rtol=1e-5)

    # Case 2: 2-D embeddings (batch, hidden), reduction along dim=1 (last dim).
    e0 = jax.random.normal(k2, (8, 32), jnp.float32)
    e1 = jax.random.normal(k3, (8, 32), jnp.float32)
    out2 = cosine_pair_forward(e0, e1, dim=1)
    out2 = jax.block_until_ready(out2)
    ref2 = cosine_pair_reference(e0, e1, dim=1)
    assert out2.shape == (8,)
    assert jnp.allclose(out2, ref2, atol=1e-5, rtol=1e-5)

    print("KERNEL_OK")
</pallas_src>

<mosaic_0001>
module attributes {stable_mosaic.version = 11 : i64} {
  func.func @_cosine_sublane_kernel(%arg0: i32, %arg1: i32, %arg2: memref<1x4x256xf32, #tpu.memory_space<vmem>>, %arg3: memref<1x4x256xf32, #tpu.memory_space<vmem>>, %arg4: memref<1x1x256xf32, #tpu.memory_space<vmem>>) attributes {dimension_semantics = [#tpu.dimension_semantics<parallel>, #tpu.dimension_semantics<parallel>], iteration_bounds = array<i64: 2, 1>, scalar_prefetch = 0 : i64, scratch_operands = 0 : i64, tpu.core_type = #tpu.core_type<tc>, window_params = [{transform_indices = @transform_0, window_bounds = array<i64: 1, 4, 256>}, {transform_indices = @transform_1, window_bounds = array<i64: 1, 4, 256>}, {transform_indices = @transform_2, window_bounds = array<i64: 1, 1, 256>}]} {
    %c0 = arith.constant 0 : index
    %c0_0 = arith.constant 0 : index
    %c0_1 = arith.constant 0 : index
    %0 = vector.load %arg2[%c0, %c0_0, %c0_1] : memref<1x4x256xf32, #tpu.memory_space<vmem>>, vector<1x4x256xf32>
    %c0_2 = arith.constant 0 : index
    %c0_3 = arith.constant 0 : index
    %c0_4 = arith.constant 0 : index
    %1 = vector.load %arg3[%c0_2, %c0_3, %c0_4] : memref<1x4x256xf32, #tpu.memory_space<vmem>>, vector<1x4x256xf32>
    %2 = arith.mulf %0, %1 : vector<1x4x256xf32>
    %cst = arith.constant dense<0.000000e+00> : vector<1x256xf32>
    %3 = vector.multi_reduction <add>, %2, %cst [1] : vector<1x4x256xf32> to vector<1x256xf32>
    %4 = vector.shape_cast %3 : vector<1x256xf32> to vector<1x1x256xf32>
    %5 = arith.mulf %0, %0 : vector<1x4x256xf32>
    %cst_5 = arith.constant dense<0.000000e+00> : vector<1x256xf32>
    %6 = vector.multi_reduction <add>, %5, %cst_5 [1] : vector<1x4x256xf32> to vector<1x256xf32>
    %7 = vector.shape_cast %6 : vector<1x256xf32> to vector<1x1x256xf32>
    %8 = arith.mulf %1, %1 : vector<1x4x256xf32>
    %cst_6 = arith.constant dense<0.000000e+00> : vector<1x256xf32>
    %9 = vector.multi_reduction <add>, %8, %cst_6 [1] : vector<1x4x256xf32> to vector<1x256xf32>
    %10 = vector.shape_cast %9 : vector<1x256xf32> to vector<1x1x256xf32>
    %11 = arith.mulf %7, %10 : vector<1x1x256xf32>
    %cst_7 = arith.constant 1.000000e-16 : f32
    %12 = vector.broadcast %cst_7 : f32 to vector<1x1x256xf32>
    %13 = arith.maximumf %11, %12 : vector<1x1x256xf32>
    %14 = math.rsqrt %13 : vector<1x1x256xf32>
    %15 = arith.mulf %4, %14 : vector<1x1x256xf32>
    %c0_8 = arith.constant 0 : index
    %c0_9 = arith.constant 0 : index
    %c0_10 = arith.constant 0 : index
    %16 = vector.load %arg4[%c0_8, %c0_9, %c0_10] : memref<1x1x256xf32, #tpu.memory_space<vmem>>, vector<1x1x256xf32>
    tpu.vector_store %arg4[%c0_8, %c0_9, %c0_10], %15 {strides = array<i32>} : memref<1x1x256xf32, #tpu.memory_space<vmem>>, vector<1x1x256xf32>,
    return
  }
  func.func @transform_0(%arg0: i32, %arg1: i32) -> (i32, i32, i32) {
    %c0_i32 = arith.constant 0 : i32
    %c0_i32_0 = arith.constant 0 : i32
    return %arg0, %c0_i32, %arg1 : i32, i32, i32
  }
  func.func @transform_1(%arg0: i32, %arg1: i32) -> (i32, i32, i32) {
    %c0_i32 = arith.constant 0 : i32
    %c0_i32_0 = arith.constant 0 : i32
    return %arg0, %c0_i32, %arg1 : i32, i32, i32
  }
  func.func @transform_2(%arg0: i32, %arg1: i32) -> (i32, i32, i32) {
    %c0_i32 = arith.constant 0 : i32
    %c0_i32_0 = arith.constant 0 : i32
    return %arg0, %c0_i32, %arg1 : i32, i32, i32
  }
}

</mosaic_0001>

<bundles_post_ra>
// kernel: tpu_custom_call.1
= control target key start
LH: loop header
LB: loop body
LE: loop exit
PB: predicated region body
PF: predicated region fallthrough
CT: control target
= control target key end

     0   :  { %7 = vsyncpa [#allocation3], 0  ;;  %s846_s0 = inlined_call_operand.hbm [shape: f32[2,4,256], index: 0, kind: input, shape index: {}]   ;;  %s847_s1 = inlined_call_operand.hbm [shape: f32[2,4,256], index: 1, kind: input, shape index: {}]   ;;  %s848_s2 = inlined_call_operand.hbm [shape: f32[2,1,256], index: 2, kind: output, shape index: {}]  }
   0x1   :  { %9 = vsyncpa [#allocation3 + $0x1], 0 }
   0x2   :  { %10 = vsyncpa [#allocation6], 0 }
   0x3   :  { %12 = vsyncpa [#allocation6 + $0x1], 0 }
   0x4   :  { %13 = vsyncpa [#allocation4], 0 }
   0x5   :  { %15 = vsyncpa [#allocation4 + $0x1], 0  ;;  %s711_s9 = smov 0   ;;  %s713_s10 = smov 0  }
   0x6   :  { %s715_s11 = smov 0   ;;  %s717_s12 = smov 0  }
   0x7   :  { %s719_s13 = smov 0   ;;  %s721_s14 = smov 0  }
   0x8 LB: > { %s457_s15 = sadd.s32 4294967295, %s694_s14   ;;  %s458_s16 = sadd.s32 4294967294, %s694_s14   ;;  %s694_s14 = sphi %s721_s14, %s21_s14   ;;  %s690_s13 = sphi %s719_s13, %s857_s13   ;;  %s686_s12 = sphi %s717_s12, %s856_s12   ;;  %s682_s11 = sphi %s715_s11, %s855_s11   ;;  %s678_s10 = sphi %s713_s10, %s854_s10   ;;  %s674_s9 = sphi %s711_s9, %s853_s9  }
   0x9   : > { %s33_s17 = sadd.s32 1, %s690_s13  ;;  %s42_s18 = sadd.s32 1, %s682_s11 }
   0xa   : > { %p35_p0 = scmp.ge.s32.totalorder %s33_s17, 2  ;;  %p49_p1 = scmp.ne.s32.totalorder %s682_s11, %s678_s10 }
   0xb   : > { %p50_p2 = scmp.eq.s32.totalorder %s694_s14, 0  ;;  %p55_p3 = scmp.ne.s32.totalorder %s678_s10, %s674_s9 }
   0xc   : > { %s859_s17 = smov (%p35_p0, %s33_s17), 0  ;;  %p56_p5 = scmp.eq.s32.totalorder %s457_s15, 0 }
   0xd   : > { %p752_p4 = por %p50_p2, %p49_p1  ;;  %s37_s20 = ssub.s32 %s690_s13, %s859_s17 }
   0xe   : > { %p109_p6 = scmp.eq.s32.totalorder %s457_s15, 1  ;;  %p40_p7 = scmp.eq.s32.totalorder %s37_s20, 0 }
   0xf   : > { %p758_p8 = por %p56_p5, %p55_p3  ;;  %p115_p10 = scmp.eq.s32.totalorder %s458_s16, 1 }
  0x10   : > { %p762_p9 = por %p109_p6, %p49_p1  ;;  %p460_p12 = scmp.ge.s32.totalorder %s694_s14, 2 }
  0x11   : > { %s767_s23 = scalar_select %p40_p7, %s682_s11, %s42_s18  }
  0x12   : > { %p769_p11 = por %p115_p10, %p55_p3  ;;  %p494_p13 = scmp.lt.s32.totalorder %s694_s14, 2 }
  0x13   : > { %s135_s25 = sand.u32 1, %s682_s11   ;;  %s475_s27 = sshll.u32 %s690_s13, 3 }
  0x14   : > { %s461_s26 = sshll.u32 %s135_s25, 3  ;;  %s146_s30 = scalar_lea.hbm %s846_s0, %s475_s27 }
  0x15   : > { %s139_s3 = scalar_lea.vmem [#allocation2], %s461_s26  ;;  %s148_s5 = sshll.u32 %s146_s30, 4  ;;  %s149_s5 = int_to_ptr.hbm [resolvable:$true] %s148_s5 }
  0x16   : > { %s150_s4 = sshll.u32 %s139_s3, 4  ;;  %p484_p0 = pnand %p494_p13, %p752_p4  ;;  %s151_s4 = int_to_ptr.vmem [resolvable:$true] %s150_s4 }
  0x17   : > { %p467_p1 = scmp.ge.s32.totalorder %s694_s14, 1  ;;  %p177_p2 = scmp.lt.s32.totalorder %s694_s14, 3 }
  0x18   : > { %s136_s6 = scalar_lea.sflag [#allocation3], %s135_s25  ;;  %s168_s15 = scalar_lea.hbm %s847_s1, %s475_s27 }
  0x19   : > { %486 = dma.hbm_to_vmem [thread:$0]  (!%p484_p0), %s149_s5, 128, %s151_s4, %s136_s6  }
  0x1a   : > { %p178_p3 = pnand %p467_p1, %p177_p2  ;;  %s161_s16 = scalar_lea.vmem [#allocation5], %s461_s26 }
  0x1b   : > { %s172_s18 = sshll.u32 %s161_s16, 4  ;;  %s170_s20 = sshll.u32 %s168_s15, 4  ;;  %s173_s18 = int_to_ptr.vmem [resolvable:$true] %s172_s18  ;;  %s171_s20 = int_to_ptr.hbm [resolvable:$true] %s170_s20 }
  0x1c   : > { %s158_s28 = scalar_lea.sflag [#allocation6], %s135_s25  ;;  %181 = sbr.rel (%p178_p3) target bundleno = 107 (0x6b), region = 28 }
  0x1d   : > { %489 = dma.hbm_to_vmem [thread:$0]  (!%p484_p0), %s171_s20, 128, %s173_s18, %s158_s28  }
  0x1e   : > { %s788_s19 = sand.u32 (!%p178_p3), 1, %s678_s10  }
  0x1f   : > { %s468_s29 = sshll.u32 (!%p178_p3), %s788_s19, 3  ;;  %s184_s30 = scalar_lea.sflag (!%p178_p3), [#allocation3], %s788_s19 }
  0x20   : > { %s187_s3 = scalar_lea.vmem (!%p178_p3), [#allocation2], %s468_s29 }
  0x21   : > { %661 = dma.done.wait (%p758_p8), %s184_s30, 128  }
  0x22   : > { %663 = vsyncadd (%p758_p8), %s184_s30, 4294967168  ;;  %s194_s26 = scalar_lea.sflag [#allocation6], %s788_s19  ;;  %s197_s25 = scalar_lea.vmem [#allocation5], %s468_s29 }
  0x23   : > { %665 = dma.done.wait (%p758_p8), %s194_s26, 128  }
  0x24   : > { %667 = vsyncadd (%p758_p8), %s194_s26, 4294967168  ;;  %v227_v0 = vld [vmem:[%s187_s3] sm:$0xff]  ;;  %v228_v1 = vld [vmem:[%s197_s25] sm:$0xff]  ;;  %vm236_vm0 = vcmask 1043456   ;;  %s470_s21 = sshll.u32 %s788_s19, 1  ;;  %s472_s27 = sshll.u32 %s686_s12, 1 }
  0x25   : > { %v229_v2 = vmul.f32 %v228_v1, %v227_v0  ;;  %v251_v3 = vmul.f32 %v227_v0, %v227_v0  ;;  %v272_v6 = vmul.f32 %v228_v1, %v228_v1  ;;  %s343_s6 = scalar_lea.hbm %s848_s2, %s472_s27  ;;  %s223_s12 = scalar_lea.vmem [#allocation7], %s470_s21  ;;  %vm322_vm7 = vcmask 1040384  }
  0x26   : > { %s345_s7 = sshll.u32 %s223_s12, 4  ;;  %s347_s8 = sshll.u32 %s343_s6, 4  ;;  %s346_s7 = int_to_ptr.vmem [resolvable:$true] %s345_s7  ;;  %s348_s8 = int_to_ptr.hbm [resolvable:$true] %s347_s8 }
  0x27   : > { %231 = vst [vmem:[#allocation1] ss:$2 sm:$0xff] %v229_v2  ;;  %s331_s15 = scalar_lea.sflag [#allocation4], %s788_s19  ;;  %s622_s16 = sshra.s32 %s348_s8, 4  ;;  %s623_s16 = int_to_ptr.hbm [resolvable:$true] %s622_s16 }
  0x28   : > { %s624_s18 = scalar_lea.hbm %s623_s16, 2  ;;  %s628_s29 = scalar_lea.hbm %s848_s2, 4 }
  0x29   : > { %p625_p4 = scmp.ne.s32.totalorder %s623_s16, %s624_s18  ;;  %p629_p7 = scmp.lt.s32.totalorder %s623_s16, %s848_s2 }
  0x2a   : > { %p630_p8 = scmp.lt.s32.totalorder %s628_s29, %s624_s18 }
  0x2b   : > { %p626_p5 = pnand %p625_p4, %p762_p9 }
  0x2c   : > { %p631_p10 = por %p630_p8, %p629_p7 }
  0x2d   : > { %p627_p6 = pneg %p626_p5 }
  0x2e   : > { %v232_v4 = vld.sshfl [vmem:[#allocation1] sm:$0xff pattern:$0x75316420]  ;;  %v233_v5 = vld.sshfl [vmem:[#allocation1 + $0x8] sm:$0xff pattern:$0x75316420] }
  0x2f   : > { %253 = vst [vmem:[#allocation1] ss:$2 sm:$0xff] %v251_v3  ;;  %v244_v35 = vsel %vm236_vm0, %v233_v5, 0.0  ;;  %v237_v40 = vsel %vm236_vm0, %v232_v4, 0.0  ;;  %v325_v4 = vlaneseq  ;;  %p632_p13 = pnand %p631_p10, %p627_p6 }
  0x30   : > { %v245_v43 = vrot.slane %v244_v35, 4  ;;  %v238_v46 = vrot.slane %v237_v40, 4 }
  0x31   : > { %vm327_vm8 = vcmp.lt.s32.totalorder %v325_v4, 256 }
  0x32   : > { %v246_v47 = vadd.f32 %v245_v43, %v244_v35  ;;  %v239_v48 = vadd.f32 %v238_v46, %v237_v40 }
  0x34   : > { %v247_v49 = vrot.slane %v246_v47, 2  ;;  %v240_v52 = vrot.slane %v239_v48, 2 }
  0x36   : > { %v254_v7 = vld.sshfl [vmem:[#allocation1] sm:$0xff pattern:$0x75316420]  ;;  %v255_v8 = vld.sshfl [vmem:[#allocation1 + $0x8] sm:$0xff pattern:$0x75316420]  ;;  %v248_v55 = vadd.f32 %v247_v49, %v246_v47  ;;  %v241_v58 = vadd.f32 %v240_v52, %v239_v48 }
  0x37   : > { %v258_v9 = vsel %vm236_vm0, %v254_v7, 0.0  ;;  %v265_v10 = vsel %vm236_vm0, %v255_v8, 0.0  ;;  %274 = vst [vmem:[#allocation1] ss:$2 sm:$0xff] %v272_v6 }
  0x38   : > { %v259_v11 = vrot.slane %v258_v9, 4  ;;  %v266_v12 = vrot.slane %v265_v10, 4  ;;  %v249_v61 = vrot.slane %v248_v55, 1  ;;  %v242_v0 = vrot.slane %v241_v58, 1 }
  0x3a   : > { %v260_v13 = vadd.f32 %v259_v11, %v258_v9  ;;  %v267_v14 = vadd.f32 %v266_v12, %v265_v10  ;;  %v250_v3 = vadd.f32 %v249_v61, %v248_v55  ;;  %v243_v7 = vadd.f32 %v242_v0, %v241_v58 }
  0x3c   : > { %v261_v15 = vrot.slane %v260_v13, 2  ;;  %v268_v16 = vrot.slane %v267_v14, 2 }
  0x3e   : > { %v275_v17 = vld.sshfl [vmem:[#allocation1] sm:$0xff pattern:$0x75316420]  ;;  %v276_v18 = vld.sshfl [vmem:[#allocation1 + $0x8] sm:$0xff pattern:$0x75316420]  ;;  %v262_v23 = vadd.f32 %v261_v15, %v260_v13  ;;  %v269_v24 = vadd.f32 %v268_v16, %v267_v14 }
  0x3f   : > { %v279_v19 = vsel %vm236_vm0, %v275_v17, 0.0  ;;  %v286_v20 = vsel %vm236_vm0, %v276_v18, 0.0 }
  0x40   : > { %v280_v21 = vrot.slane %v279_v19, 4  ;;  %v287_v22 = vrot.slane %v286_v20, 4  ;;  %v263_v29 = vrot.slane %v262_v23, 1  ;;  %v270_v30 = vrot.slane %v269_v24, 1 }
  0x42   : > { %v281_v25 = vadd.f32 %v280_v21, %v279_v19  ;;  %v288_v26 = vadd.f32 %v287_v22, %v286_v20  ;;  %v264_v36 = vadd.f32 %v263_v29, %v262_v23  ;;  %v271_v37 = vadd.f32 %v270_v30, %v269_v24 }
  0x44   : > { %v282_v27 = vrot.slane %v281_v25, 2  ;;  %v289_v28 = vrot.slane %v288_v26, 2 }
  0x46   : > { %v283_v31 = vadd.f32 %v282_v27, %v281_v25  ;;  %v290_v32 = vadd.f32 %v289_v28, %v288_v26 }
  0x48   : > { %v284_v33 = vrot.slane %v283_v31, 1  ;;  %v291_v34 = vrot.slane %v290_v32, 1 }
  0x4a   : > { %v285_v38 = vadd.f32 %v284_v33, %v283_v31  ;;  %v292_v39 = vadd.f32 %v291_v34, %v290_v32 }
  0x4c   : > { %v293_v41 = vmul.f32 %v285_v38, %v264_v36  ;;  %v294_v42 = vmul.f32 %v292_v39, %v271_v37 }
  0x4e   : > { %v295_v44 = vmax.f32 %v293_v41, 1e-16  ;;  %v296_v45 = vmax.f32 %v294_v42, 1e-16 }
  0x50   : > { %544 = vrsqrt.f32 %v295_v44  ;;  %vm303_vm3 = vweird.f32 %v295_v44  ;;  %vm313_vm5 = vweird.f32 %v296_v45 }
  0x51   : > { %546 = vrsqrt.f32 %v296_v45 }
  0x56   : > { %v545_v50 = vpop.eup %544 }
  0x57   : > { %v547_v51 = vpop.eup %546  ;;  %v298_v53 = vmul.f32 %v545_v50, %v295_v44  ;;  %vm304_vm1 = vweird.f32 %v545_v50 }
  0x58   : > { %v308_v54 = vmul.f32 %v547_v51, %v296_v45  ;;  %vm314_vm2 = vweird.f32 %v547_v51  ;;  %vm305_vm4 = vmor %vm303_vm3, %vm304_vm1 }
  0x59   : > { %v299_v56 = vmul.f32 %v545_v50, %v298_v53  ;;  %vm315_vm6 = vmor %vm313_vm5, %vm314_vm2 }
  0x5a   : > { %v309_v57 = vmul.f32 %v547_v51, %v308_v54 }
  0x5b   : > { %v300_v59 = vmul.f32 0.5, %v299_v56 }
  0x5c   : > { %v310_v60 = vmul.f32 0.5, %v309_v57 }
  0x5d   : > { %v301_v62 = vsub.f32 1.5, %v300_v59 }
  0x5e   : > { %v311_v63 = vsub.f32 1.5, %v310_v60 }
  0x5f   : > { %v302_v1 = vmul.f32 %v545_v50, %v301_v62 }
  0x60   : > { %v312_v2 = vmul.f32 %v547_v51, %v311_v63 }
  0x61   : > { %v306_v5 = vsel %vm305_vm4, %v545_v50, %v302_v1 }
  0x62   : > { %v316_v6 = vsel %vm315_vm6, %v547_v51, %v312_v2  ;;  %v317_v9 = vmul.f32 %v306_v5, %v243_v7 }
  0x63   : > { %v318_v8 = vmul.f32 %v316_v6, %v250_v3 }
  0x65   : > { %v321_v10 = vrot.slane %v318_v8, 7 }
  0x67   : > { %v323_v11 = vsel %vm322_vm7, %v317_v9, %v321_v10 }
  0x68   : > { %329 = vst.msk [vmem:[%s223_s12] sm:$0x3] %vm327_vm8, %v323_v11 }
  0x69   : > { %635 = shalt.err (!%p632_p13)
}
  0x6a   : > { %481 = dma.vmem_to_hbm [thread:$0]  (%p762_p9), %s346_s7, 32, %s348_s8, %s331_s15  }
  0x6b PF: > { %s359_s19 = sand.u32 1, %s674_s9   ;;  %p491_p0 = pnand %p460_p12, %p769_p11 }
  0x6c   : > { %s360_s26 = scalar_lea.sflag [#allocation4], %s359_s19 }
  0x6d   : > { %p492_p1 = pneg %p491_p0 }
  0x6f   : > { %669 = dma.done.wait (%p492_p1), %s360_s26, 32  }
  0x70   : > { %671 = vsyncadd (%p492_p1), %s360_s26, 4294967264  ;;  %s21_s14 = sadd.s32 1, %s694_s14   ;;  %s853_s9 = smov %s678_s10 }
  0x71   : > { %p18_p2 = scmp.ge.s32.totalorder %s21_s14, 4   ;;  %s854_s10 = smov %s682_s11 }
  0x72   : > { %s855_s11 = smov %s767_s23  ;;  %s856_s12 = smov %s690_s13 }
  0x73   : > { %s857_s13 = smov %s859_s17  ;;  %20 = sbr.rel (!%p18_p2) target bundleno = 8 (0x8), region = 86 }
  0x78   :  { %366 = vsyncpa [#allocation3], 1 }
  0x79   :  { %368 = vsyncpa [#allocation3 + $0x1], 1 }
  0x7a   :  { %369 = vsyncpa [#allocation6], 1 }
  0x7b   :  { %371 = vsyncpa [#allocation6 + $0x1], 1 }
  0x7c   :  { %372 = vsyncpa [#allocation4], 1 }
  0x7d   :  { %374 = vsyncpa [#allocation4 + $0x1], 1 }

</bundles_post_ra>
